<compile_context>
chip_gen: v5e
topology: v5e:2x2
jax: 0.10.0
libtpu: 0.0.40
codegen_flags: <defaults>
</compile_context>

<pallas_src>
import jax
import jax.numpy as jnp
from jax import lax
from jax.experimental import pallas as pl
from jax.experimental.pallas import tpu as pltpu

# Sobel kernels (same as the PyTorch module's x_kernel / y_kernel)
KX = ((1, 0, -1), (2, 0, -2), (1, 0, -1))
KY = ((1, 2, 1), (0, 0, 0), (-1, -2, -1))


def _gradient_kernel(x_ref, o_ref):
    # x_ref: (1, C, H, W)  unpadded input tile (one batch element)
    # o_ref: (1, 1, H, W)  Sobel gradient magnitude (single channel)
    C = x_ref.shape[1]
    H = o_ref.shape[2]
    W = o_ref.shape[3]
    f32 = jnp.float32

    # --- sum over input channels BEFORE the Sobel taps (conv is linear and the
    #     filter is the same for every input channel) ---------------------------
    xs = x_ref[0, 0].astype(f32)
    for c in range(1, C):
        xs = xs + x_ref[0, c].astype(f32)          # (H, W)

    zrow = jnp.zeros((1, W), f32)
    zcol = jnp.zeros((H, 1), f32)

    # --- vertical pass (sublane-axis shifts, zero halo) ------------------------
    up = jnp.concatenate([zrow, xs[:-1, :]], axis=0)     # xs[i-1, j]
    down = jnp.concatenate([xs[1:, :], zrow], axis=0)    # xs[i+1, j]
    t = up + 2.0 * xs + down                             # rows smoothed [1,2,1]
    d = up - down                                        # rows diffed   [1,0,-1]

    # --- horizontal pass (lane-axis shifts, zero halo) -------------------------
    tl = jnp.concatenate([zcol, t[:, :-1]], axis=1)      # t[i, j-1]
    tr = jnp.concatenate([t[:, 1:], zcol], axis=1)       # t[i, j+1]
    dl = jnp.concatenate([zcol, d[:, :-1]], axis=1)      # d[i, j-1]
    dr = jnp.concatenate([d[:, 1:], zcol], axis=1)       # d[i, j+1]

    gx = tl - tr                                         # cols diffed   [1,0,-1]
    gy = dl + 2.0 * d + dr                               # cols smoothed [1,2,1]

    grad = jnp.sqrt(gx * gx + gy * gy)                   # (H, W)
    o_ref[...] = grad.reshape(1, 1, H, W).astype(o_ref.dtype)


def gradient_loss(x, outdim):
    """x: (N, C, H, W) float32 -> (N, outdim, H, W) float32."""
    N, C, H, W = x.shape

    # Explicit scoped-VMEM budget: double-buffered (1,C,H,W) input block +
    # (1,1,H,W) output block + intermediates, with headroom; capped well below
    # v7x's 64 MiB physical VMEM.
    in_block = C * H * W * 4
    out_block = H * W * 4
    vmem_limit = int(min(48 * 1024 * 1024,
                         max(16 * 1024 * 1024, 3 * (in_block + out_block))))

    grad = pl.pallas_call(
        _gradient_kernel,
        out_shape=jax.ShapeDtypeStruct((N, 1, H, W), jnp.float32),
        grid_spec=pltpu.PrefetchScalarGridSpec(
            num_scalar_prefetch=0,
            grid=(N,),
            in_specs=[pl.BlockSpec((1, C, H, W), lambda n: (n, 0, 0, 0))],
            out_specs=pl.BlockSpec((1, 1, H, W), lambda n: (n, 0, 0, 0)),
        ),
        compiler_params=pltpu.CompilerParams(
            dimension_semantics=("parallel",),
            vmem_limit_bytes=vmem_limit),
    )(x)

    # Every output channel is identical (weight.copy_(3x3) broadcasts the same
    # filter to all (out,in) pairs), so broadcast lazily outside the kernel
    # instead of writing the same data outdim times from VMEM to HBM.
    return jnp.broadcast_to(grad, (N, outdim, H, W))


def _reference(x, outdim):
    """Pure-JAX reference matching PyTorch semantics (for validation)."""
    C = x.shape[1]
    kx = jnp.broadcast_to(jnp.array(KX, jnp.float32), (outdim, C, 3, 3))
    ky = jnp.broadcast_to(jnp.array(KY, jnp.float32), (outdim, C, 3, 3))
    dn = lax.conv_dimension_numbers(x.shape, kx.shape, ("NCHW", "OIHW", "NCHW"))
    gx = lax.conv_general_dilated(x, kx, (1, 1), ((1, 1), (1, 1)),
                                  dimension_numbers=dn)
    gy = lax.conv_general_dilated(x, ky, (1, 1), ((1, 1), (1, 1)),
                                  dimension_numbers=dn)
    return jnp.sqrt(gx * gx + gy * gy)


if __name__ == "__main__":
    key = jax.random.PRNGKey(0)
    N, C, H, W = 2, 4, 16, 16
    OUTDIM = 4
    x = jax.random.normal(key, (N, C, H, W), dtype=jnp.float32)

    out = gradient_loss(x, OUTDIM)
    out = jax.block_until_ready(out)

    ref = jax.block_until_ready(_reference(x, OUTDIM))
    assert out.shape == (N, OUTDIM, H, W)
    assert jnp.allclose(out, ref, atol=1e-4, rtol=1e-4)

    print("KERNEL_OK")
</pallas_src>

<mosaic_0001>
module attributes {stable_mosaic.version = 11 : i64} {
  func.func @_gradient_kernel(%arg0: i32, %arg1: memref<1x4x16x16xf32, #tpu.memory_space<vmem>>, %arg2: memref<1x1x16x16xf32, #tpu.memory_space<vmem>>) attributes {dimension_semantics = [#tpu.dimension_semantics<parallel>], iteration_bounds = array<i64: 2>, scalar_prefetch = 0 : i64, scratch_operands = 0 : i64, tpu.core_type = #tpu.core_type<tc>, window_params = [{transform_indices = @transform_0, window_bounds = array<i64: 1, 4, 16, 16>}, {transform_indices = @transform_1, window_bounds = array<i64: 1, 1, 16, 16>}]} {
    %c0 = arith.constant 0 : index
    %c0_0 = arith.constant 0 : index
    %c0_1 = arith.constant 0 : index
    %c0_2 = arith.constant 0 : index
    %0 = vector.load %arg1[%c0, %c0_0, %c0_1, %c0_2] : memref<1x4x16x16xf32, #tpu.memory_space<vmem>>, vector<1x1x16x16xf32>
    %1 = vector.shape_cast %0 : vector<1x1x16x16xf32> to vector<16x16xf32>
    %c0_3 = arith.constant 0 : index
    %c1 = arith.constant 1 : index
    %c0_4 = arith.constant 0 : index
    %c0_5 = arith.constant 0 : index
    %2 = vector.load %arg1[%c0_3, %c1, %c0_4, %c0_5] : memref<1x4x16x16xf32, #tpu.memory_space<vmem>>, vector<1x1x16x16xf32>
    %3 = vector.shape_cast %2 : vector<1x1x16x16xf32> to vector<16x16xf32>
    %4 = arith.addf %1, %3 : vector<16x16xf32>
    %c0_6 = arith.constant 0 : index
    %c2 = arith.constant 2 : index
    %c0_7 = arith.constant 0 : index
    %c0_8 = arith.constant 0 : index
    %5 = vector.load %arg1[%c0_6, %c2, %c0_7, %c0_8] : memref<1x4x16x16xf32, #tpu.memory_space<vmem>>, vector<1x1x16x16xf32>
    %6 = vector.shape_cast %5 : vector<1x1x16x16xf32> to vector<16x16xf32>
    %7 = arith.addf %4, %6 : vector<16x16xf32>
    %c0_9 = arith.constant 0 : index
    %c3 = arith.constant 3 : index
    %c0_10 = arith.constant 0 : index
    %c0_11 = arith.constant 0 : index
    %8 = vector.load %arg1[%c0_9, %c3, %c0_10, %c0_11] : memref<1x4x16x16xf32, #tpu.memory_space<vmem>>, vector<1x1x16x16xf32>
    %9 = vector.shape_cast %8 : vector<1x1x16x16xf32> to vector<16x16xf32>
    %10 = arith.addf %7, %9 : vector<16x16xf32>
    %cst = arith.constant 0.000000e+00 : f32
    %11 = vector.broadcast %cst : f32 to vector<1x16xf32>
    %cst_12 = arith.constant 0.000000e+00 : f32
    %12 = vector.broadcast %cst_12 : f32 to vector<16x1xf32>
    %13 = vector.extract_strided_slice %10 {offsets = [0, 0], sizes = [15, 16], strides = [1, 1]} : vector<16x16xf32> to vector<15x16xf32>
    %14 = tpu.concatenate %11, %13 in 0 : vector<1x16xf32>, vector<15x16xf32> -> vector<16x16xf32>
    %15 = vector.extract_strided_slice %10 {offsets = [1, 0], sizes = [15, 16], strides = [1, 1]} : vector<16x16xf32> to vector<15x16xf32>
    %16 = tpu.concatenate %15, %11 in 0 : vector<15x16xf32>, vector<1x16xf32> -> vector<16x16xf32>
    %cst_13 = arith.constant 2.000000e+00 : f32
    %17 = vector.broadcast %cst_13 : f32 to vector<16x16xf32>
    %18 = arith.mulf %17, %10 : vector<16x16xf32>
    %19 = arith.addf %14, %18 : vector<16x16xf32>
    %20 = arith.addf %19, %16 : vector<16x16xf32>
    %21 = arith.subf %14, %16 : vector<16x16xf32>
    %22 = vector.extract_strided_slice %20 {offsets = [0, 0], sizes = [16, 15], strides = [1, 1]} : vector<16x16xf32> to vector<16x15xf32>
    %23 = tpu.concatenate %12, %22 in 1 : vector<16x1xf32>, vector<16x15xf32> -> vector<16x16xf32>
    %24 = vector.extract_strided_slice %20 {offsets = [0, 1], sizes = [16, 15], strides = [1, 1]} : vector<16x16xf32> to vector<16x15xf32>
    %25 = tpu.concatenate %24, %12 in 1 : vector<16x15xf32>, vector<16x1xf32> -> vector<16x16xf32>
    %26 = vector.extract_strided_slice %21 {offsets = [0, 0], sizes = [16, 15], strides = [1, 1]} : vector<16x16xf32> to vector<16x15xf32>
    %27 = tpu.concatenate %12, %26 in 1 : vector<16x1xf32>, vector<16x15xf32> -> vector<16x16xf32>
    %28 = vector.extract_strided_slice %21 {offsets = [0, 1], sizes = [16, 15], strides = [1, 1]} : vector<16x16xf32> to vector<16x15xf32>
    %29 = tpu.concatenate %28, %12 in 1 : vector<16x15xf32>, vector<16x1xf32> -> vector<16x16xf32>
    %30 = arith.subf %23, %25 : vector<16x16xf32>
    %cst_14 = arith.constant 2.000000e+00 : f32
    %31 = vector.broadcast %cst_14 : f32 to vector<16x16xf32>
    %32 = arith.mulf %31, %21 : vector<16x16xf32>
    %33 = arith.addf %27, %32 : vector<16x16xf32>
    %34 = arith.addf %33, %29 : vector<16x16xf32>
    %35 = arith.mulf %30, %30 : vector<16x16xf32>
    %36 = arith.mulf %34, %34 : vector<16x16xf32>
    %37 = arith.addf %35, %36 : vector<16x16xf32>
    %38 = math.sqrt %37 : vector<16x16xf32>
    %39 = vector.shape_cast %38 : vector<16x16xf32> to vector<1x1x16x16xf32>
    %c0_15 = arith.constant 0 : index
    %c0_16 = arith.constant 0 : index
    %c0_17 = arith.constant 0 : index
    %c0_18 = arith.constant 0 : index
    %40 = vector.load %arg2[%c0_15, %c0_16, %c0_17, %c0_18] : memref<1x1x16x16xf32, #tpu.memory_space<vmem>>, vector<1x1x16x16xf32>
    tpu.vector_store %arg2[%c0_15, %c0_16, %c0_17, %c0_18], %39 {strides = array<i32>} : memref<1x1x16x16xf32, #tpu.memory_space<vmem>>, vector<1x1x16x16xf32>,
    return
  }
  func.func @transform_0(%arg0: i32) -> (i32, i32, i32, i32) {
    %c0_i32 = arith.constant 0 : i32
    %c0_i32_0 = arith.constant 0 : i32
    %c0_i32_1 = arith.constant 0 : i32
    %c0_i32_2 = arith.constant 0 : i32
    return %arg0, %c0_i32, %c0_i32_0, %c0_i32_1 : i32, i32, i32, i32
  }
  func.func @transform_1(%arg0: i32) -> (i32, i32, i32, i32) {
    %c0_i32 = arith.constant 0 : i32
    %c0_i32_0 = arith.constant 0 : i32
    %c0_i32_1 = arith.constant 0 : i32
    %c0_i32_2 = arith.constant 0 : i32
    return %arg0, %c0_i32, %c0_i32_0, %c0_i32_1 : i32, i32, i32, i32
  }
}

</mosaic_0001>

<bundles_post_ra>
// kernel: tpu_custom_call.1
= control target key start
LH: loop header
LB: loop body
LE: loop exit
PB: predicated region body
PF: predicated region fallthrough
CT: control target
= control target key end

     0   :  { %6 = vsyncpa [#allocation3], 0  ;;  %s670_s0 = inlined_call_operand.hbm [shape: f32[2,4,16,16], index: 0, kind: input, shape index: {}]   ;;  %s671_s1 = inlined_call_operand.hbm [shape: f32[2,1,16,16], index: 1, kind: output, shape index: {}]  }
   0x1   :  { %8 = vsyncpa [#allocation3 + $0x1], 0 }
   0x2   :  { %9 = vsyncpa [#allocation4], 0 }
   0x3   :  { %11 = vsyncpa [#allocation4 + $0x1], 0  ;;  %s538_s6 = smov 0   ;;  %s540_s7 = smov 0  }
   0x4   :  { %s542_s8 = smov 0   ;;  %s544_s9 = smov 0  }
   0x5 LB: > { %s559_s10 = sadd.s32 4294967295, %s520_s9   ;;  %s346_s11 = sadd.s32 4294967294, %s520_s9   ;;  %s520_s9 = sphi %s544_s9, %s681_s9   ;;  %s516_s8 = sphi %s542_s8, %s680_s8   ;;  %s512_s7 = sphi %s540_s7, %s679_s7   ;;  %s508_s6 = sphi %s538_s6, %s678_s6  }
   0x6   : > { %s563_s12 = sadd.s32 1, %s520_s9   ;;  %s24_s13 = sadd.s32 1, %s516_s8 }
   0x7   : > { %s21_s14 = ssub.s32 %s520_s9, %s563_s12  ;;  %p31_p0 = scmp.ne.s32.totalorder %s516_s8, %s512_s7 }
   0x8   : > { %p22_p1 = scmp.eq.s32.totalorder %s21_s14, 0  ;;  %p32_p2 = scmp.eq.s32.totalorder %s520_s9, 0 }
   0x9   : > { %p37_p3 = scmp.ne.s32.totalorder %s512_s7, %s508_s6  ;;  %p38_p4 = scmp.eq.s32.totalorder %s559_s10, 0 }
   0xa   : > { %s575_s15 = scalar_select %p22_p1, %s516_s8, %s24_s13  }
   0xb   : > { %p577_p5 = por %p32_p2, %p31_p0  ;;  %p581_p6 = por %p38_p4, %p37_p3 }
   0xc   : > { %p61_p7 = scmp.eq.s32.totalorder %s559_s10, 1  ;;  %p67_p8 = scmp.eq.s32.totalorder %s346_s11, 1 }
   0xd   : > { %p380_p10 = scmp.lt.s32.totalorder %s520_s9, 2  ;;  %s87_s20 = sand.u32 1, %s516_s8  }
   0xe   : > { %p588_p11 = por %p61_p7, %p31_p0  ;;  %p592_p12 = por %p67_p8, %p37_p3 }
   0xf   : > { %s366_s21 = sshll.u32 %s520_s9, 6  ;;  %s349_s22 = sshll.u32 %s87_s20, 6 }
  0x10   : > { %s96_s25 = scalar_lea.hbm %s670_s0, %s366_s21  ;;  %s91_s27 = scalar_lea.vmem [#allocation2], %s349_s22 }
  0x11   : > { %s97_s26 = sshll.u32 %s96_s25, 4  ;;  %s99_s28 = sshll.u32 %s91_s27, 4  ;;  %s98_s26 = int_to_ptr.hbm [resolvable:$true] %s97_s26  ;;  %s100_s28 = int_to_ptr.vmem [resolvable:$true] %s99_s28 }
  0x12   : > { %p603_p13 = pnand %p380_p10, %p577_p5  ;;  %p352_p0 = scmp.ge.s32.totalorder %s520_s9, 1 }
  0x13   : > { %p107_p1 = scmp.lt.s32.totalorder %s520_s9, 3  ;;  %s88_s30 = scalar_lea.sflag [#allocation3], %s87_s20 }
  0x14   : > { %s424_s2 = sshra.s32 %s98_s26, 4  ;;  %p428_p3 = pneg %p603_p13  ;;  %s425_s2 = int_to_ptr.hbm [resolvable:$true] %s424_s2 }
  0x15   : > { %s426_s3 = scalar_lea.hbm %s425_s2, 64  ;;  %s431_s11 = scalar_lea.hbm %s670_s0, 128 }
  0x16   : > { %p427_p2 = scmp.ne.s32.totalorder %s425_s2, %s426_s3  ;;  %p432_p5 = scmp.lt.s32.totalorder %s425_s2, %s670_s0 }
  0x17   : > { %p433_p8 = scmp.lt.s32.totalorder %s431_s11, %s426_s3 }
  0x18   : > { %p429_p4 = pnand %p428_p3, %p427_p2 }
  0x19   : > { %p434_p10 = por %p433_p8, %p432_p5 }
  0x1a   : > { %p430_p7 = pneg %p429_p4 }
  0x1c   : > { %p435_p9 = pnand %p434_p10, %p430_p7 }
  0x1e   : > { %438 = shalt.err (!%p435_p9)
}
  0x1f   : > { %s522_s16 = smov 128   ;;  %s523_s20 = smov 8  }
  0x20   : > { %375 = dma.hbm_to_vmem [thread:$0]  (!%p603_p13), %s98_s26, 1024, %s100_s28, %s88_s30, %s522_s16, %s522_s16, %s523_s20  }
  0x21   : > { %p108_p2 = pnand %p352_p0, %p107_p1 }
  0x22   : > { %s624_s21 = sand.u32 (!%p108_p2), 1, %s512_s7  }
  0x23   : > { %111 = sbr.rel (%p108_p2) target bundleno = 219 (0xdb), region = 24  ;;  %s353_s22 = sshll.u32 (!%p108_p2), %s624_s21, 6 }
  0x24   : > { %s114_s23 = scalar_lea.sflag (!%p108_p2), [#allocation3], %s624_s21  ;;  %s117_s24 = scalar_lea.vmem (!%p108_p2), [#allocation2], %s353_s22 }
  0x28   : > { %499 = dma.done.wait (%p581_p6), %s114_s23, 1024  }
  0x29   : > { %501 = vsyncadd (%p581_p6), %s114_s23, 4294966272  ;;  %v137_v0 = vld [vmem:[%s117_s24] sm:$0xff]  ;;  %v138_v1 = vld [vmem:[%s117_s24 + $0x8] sm:$0xff]  ;;  %vm156_vm0 = vcmask 1040384   ;;  %vm163_vm1 = vcmask 1046528   ;;  %s524_s17 = smov 1  }
  0x2a   : > { %v355_v2 = vld [vmem:[%s117_s24 + $0x10] sm:$0xff]  ;;  %v356_v3 = vld [vmem:[%s117_s24 + $0x18] sm:$0xff]  ;;  %v357_v5 = vld [vmem:[%s117_s24 + $0x20] sm:$0xff]  ;;  %s525_s25 = smov 127   ;;  %vm186_vm2 = vcmask 7168   ;;  %vm195_vm3 = vcmask 121856  }
  0x2b   : > { %v142_v4 = vadd.f32 %v355_v2, %v137_v0  ;;  %v358_v6 = vld [vmem:[%s117_s24 + $0x28] sm:$0xff]  ;;  %v143_v7 = vadd.f32 %v356_v3, %v138_v1  ;;  %v359_v8 = vld [vmem:[%s117_s24 + $0x30] sm:$0xff]  ;;  %v360_v10 = vld [vmem:[%s117_s24 + $0x38] sm:$0xff]  ;;  %s354_s26 = sshll.u32 %s624_s21, 4  ;;  %s367_s27 = sshll.u32 %s559_s10, 4  ;;  %vm254_vm5 = vcmask 130048  }
  0x2c   : > { %s269_s30 = scalar_lea.hbm %s671_s1, %s367_s27  ;;  %s136_s2 = scalar_lea.vmem [#allocation5], %s354_s26 }
  0x2d   : > { %v147_v9 = vadd.f32 %v357_v5, %v142_v4  ;;  %v148_v11 = vadd.f32 %v358_v6, %v143_v7  ;;  %s270_s3 = sshll.u32 %s136_s2, 4  ;;  %s272_s4 = sshll.u32 %s269_s30, 4  ;;  %s271_s3 = int_to_ptr.vmem [resolvable:$true] %s270_s3  ;;  %s273_s4 = int_to_ptr.hbm [resolvable:$true] %s272_s4 }
  0x2e   : > { %s258_s10 = scalar_lea.sflag [#allocation4], %s624_s21  ;;  %s468_s5 = sshra.s32 %s273_s4, 4  ;;  %s469_s5 = int_to_ptr.hbm [resolvable:$true] %s468_s5 }
  0x2f   : > { %v152_v12 = vadd.f32 %v359_v8, %v147_v9  ;;  %v153_v13 = vadd.f32 %v360_v10, %v148_v11  ;;  %s470_s11 = scalar_lea.hbm %s469_s5, 16  ;;  %s474_s16 = scalar_lea.hbm %s671_s1, 32 }
  0x30   : > { %p471_p6 = scmp.ne.s32.totalorder %s469_s5, %s470_s11  ;;  %p475_p0 = scmp.lt.s32.totalorder %s469_s5, %s671_s1 }
  0x31   : > { %v157_v14 = vrot.slane %v152_v12, 7  ;;  %v164_v15 = vrot.slane %v152_v12, 1  ;;  %v170_v16 = vmul.f32 2.0, %v152_v12  ;;  %v165_v17 = vrot.slane %v153_v13, 1  ;;  %p476_p1 = scmp.lt.s32.totalorder %s474_s16, %s470_s11 }
  0x32   : > { %v158_v18 = vrot.slane %v153_v13, 7  ;;  %v171_v22 = vmul.f32 2.0, %v153_v13  ;;  %p472_p9 = pnand %p471_p6, %p588_p11 }
  0x33   : > { %v162_v19 = vsel %vm156_vm0, 0.0, %v157_v14  ;;  %v166_v20 = vsel %vm163_vm1, %v164_v15, %v165_v17  ;;  %v169_v26 = vsel %vm163_vm1, %v165_v17, 0.0  ;;  %p477_p3 = por %p476_p1, %p475_p0 }
  0x34   : > { %v172_v21 = vadd.f32 %v170_v16, %v162_v19  ;;  %v176_v23 = vsub.f32 %v162_v19, %v166_v20  ;;  %v159_v24 = vsel %vm156_vm0, %v157_v14, %v158_v18  ;;  %p473_p13 = pneg %p472_p9 }
  0x35   : > { %v173_v27 = vadd.f32 %v171_v22, %v159_v24  ;;  %v177_v28 = vsub.f32 %v159_v24, %v169_v26 }
  0x36   : > { %v174_v25 = vadd.f32 %v172_v21, %v166_v20  ;;  %200 = vrot.lane.b32.xlu0 %v176_v23, %s524_s17  ;;  %v218_v36 = vmul.f32 2.0, %v176_v23  ;;  %p478_p4 = pnand %p477_p3, %p473_p13 }
  0x37   : > { %v175_v29 = vadd.f32 %v173_v27, %v169_v26  ;;  %v219_v40 = vmul.f32 2.0, %v177_v28 }
  0x38   : > { %180 = vrot.lane.b32.xlu1 %v174_v25, %s524_s17  ;;  %189 = vrot.lane.b32.xlu2 %v174_v25, %s525_s25 }
  0x3e   : > { %202 = vrot.lane.b32.xlu0 %v177_v28, %s524_s17 }
  0x40   : > { %182 = vrot.lane.b32.xlu1 %v175_v29, %s524_s17  ;;  %191 = vrot.lane.b32.xlu2 %v175_v29, %s525_s25 }
  0x46   : > { %208 = vrot.lane.b32.xlu0 %v176_v23, %s525_s25 }
  0x48   : > { %210 = vrot.lane.b32.xlu1 %v177_v28, %s525_s25 }
  0x92   : > { %v190_v31 = vpop.permute.xlu2 %189 }
  0x93   : > { %v196_v38 = vsel %vm195_vm3, %v190_v31, 0.0 }
  0x9a   : > { %v192_v35 = vpop.permute.xlu2 %191 }
  0x9b   : > { %v197_v42 = vsel %vm195_vm3, %v192_v35, 0.0 }
  0xa8   : > { %v201_v30 = vpop.permute.xlu0 %200 }
  0xa9   : > { %v206_v37 = vsel %vm186_vm2, 0.0, %v201_v30 }
  0xaa   : > { %v181_v32 = vpop.permute.xlu1 %180  ;;  %v220_v44 = vadd.f32 %v218_v36, %v206_v37 }
  0xab   : > { %v187_v39 = vsel %vm186_vm2, 0.0, %v181_v32 }
  0xac   : > { %v216_v45 = vsub.f32 %v187_v39, %v196_v38 }
  0xae   : > { %v224_v54 = vmul.f32 %v216_v45, %v216_v45 }
  0xb0   : > { %v203_v33 = vpop.permute.xlu0 %202 }
  0xb1   : > { %v207_v41 = vsel %vm186_vm2, 0.0, %v203_v33 }
  0xb2   : > { %v183_v34 = vpop.permute.xlu1 %182  ;;  %v221_v47 = vadd.f32 %v219_v40, %v207_v41 }
  0xb3   : > { %v188_v43 = vsel %vm186_vm2, 0.0, %v183_v34 }
  0xb4   : > { %v217_v48 = vsub.f32 %v188_v43, %v197_v42 }
  0xb6   : > { %v225_v56 = vmul.f32 %v217_v48, %v217_v48 }
  0xb8   : > { %v209_v46 = vpop.permute.xlu0 %208 }
  0xb9   : > { %v214_v49 = vsel %vm195_vm3, %v209_v46, 0.0 }
  0xba   : > { %v211_v50 = vpop.permute.xlu1 %210  ;;  %v222_v51 = vadd.f32 %v220_v44, %v214_v49 }
  0xbb   : > { %v215_v52 = vsel %vm195_vm3, %v211_v50, 0.0 }
  0xbc   : > { %v223_v53 = vadd.f32 %v221_v47, %v215_v52  ;;  %v226_v55 = vmul.f32 %v222_v51, %v222_v51 }
  0xbe   : > { %v227_v57 = vmul.f32 %v223_v53, %v223_v53  ;;  %v228_v58 = vadd.f32 %v226_v55, %v224_v54 }
  0xc0   : > { %v229_v59 = vadd.f32 %v227_v57, %v225_v56  ;;  %420 = vrsqrt.f32 %v228_v58  ;;  %vm237_vm4 = vcmp.eq.f32.partialorder %v228_v58, inf  ;;  %v240_v9 = vand.u32 2147483648, %v228_v58 }
  0xc1   : > { %vm239_vm6 = vcmp.eq.f32.partialorder %v228_v58, 0.0 }
  0xc2   : > { %422 = vrsqrt.f32 %v229_v59  ;;  %vm249_vm7 = vcmp.eq.f32.partialorder %v229_v59, inf  ;;  %v252_v12 = vand.u32 2147483648, %v229_v59  ;;  %vm251_vm8 = vcmp.eq.f32.partialorder %v229_v59, 0.0 }
  0xc6   : > { %v421_v60 = vpop.eup %420 }
  0xc7   : > { %v231_v62 = vmul.f32 %v421_v60, %v228_v58 }
  0xc8   : > { %v423_v61 = vpop.eup %422 }
  0xc9   : > { %v243_v63 = vmul.f32 %v423_v61, %v229_v59  ;;  %v232_v0 = vmul.f32 %v421_v60, %v231_v62 }
  0xcb   : > { %v244_v1 = vmul.f32 %v423_v61, %v243_v63  ;;  %v233_v2 = vmul.f32 0.5, %v232_v0 }
  0xcd   : > { %v245_v3 = vmul.f32 0.5, %v244_v1  ;;  %v234_v4 = vsub.f32 1.5, %v233_v2 }
  0xcf   : > { %v246_v5 = vsub.f32 1.5, %v245_v3  ;;  %v235_v6 = vmul.f32 %v421_v60, %v234_v4 }
  0xd1   : > { %v247_v7 = vmul.f32 %v423_v61, %v246_v5  ;;  %v236_v8 = vmul.f32 %v235_v6, %v228_v58 }
  0xd3   : > { %v248_v10 = vmul.f32 %v247_v7, %v229_v59  ;;  %v238_v11 = vsel %vm237_vm4, %v228_v58, %v236_v8 }
  0xd4   : > { %v241_v13 = vsel %vm239_vm6, %v240_v9, %v238_v11 }
  0xd5   : > { %v250_v14 = vsel %vm249_vm7, %v229_v59, %v248_v10  ;;  %255 = vst.msk [vmem:[%s136_s2] sm:$0xff] %vm254_vm5, %v241_v13 }
  0xd6   : > { %v253_v15 = vsel %vm251_vm8, %v252_v12, %v250_v14 }
  0xd7   : > { %256 = vst.msk [vmem:[%s136_s2 + $0x8] sm:$0xff] %vm254_vm5, %v253_v15 }
  0xd8   : > { %481 = shalt.err (!%p478_p4)
}
  0xd9   : > { %s526_s21 = smov 128   ;;  %s527_s23 = smov 8  }
  0xda   : > { %370 = dma.vmem_to_hbm [thread:$0]  (%p588_p11), %s271_s3, 256, %s273_s4, %s258_s10, %s526_s21, %s526_s21, %s527_s23  }
  0xdb PF: > { %s287_s24 = sand.u32 1, %s508_s6   ;;  %p677_p7 = scmp.ge.s32.totalorder %s520_s9, 2 }
  0xdc   : > { %s288_s17 = scalar_lea.sflag [#allocation4], %s287_s24 }
  0xdd   : > { %p377_p5 = pnand %p677_p7, %p592_p12 }
  0xdf   : > { %p378_p8 = pneg %p377_p5 }
  0xe1   : > { %503 = dma.done.wait (%p378_p8), %s288_s17, 256  }
  0xe2   : > { %505 = vsyncadd (%p378_p8), %s288_s17, 4294967040  ;;  %p14_p10 = scmp.ge.s32.totalorder %s563_s12, 4   ;;  %s678_s6 = smov %s512_s7 }
  0xe3   : > { %s679_s7 = smov %s516_s8  ;;  %s680_s8 = smov %s575_s15 }
  0xe4   : > { %s681_s9 = smov %s563_s12  ;;  %16 = sbr.rel (!%p14_p10) target bundleno = 5 (0x5), region = 72 }
  0xe9   :  { %294 = vsyncpa [#allocation3], 1 }
  0xea   :  { %296 = vsyncpa [#allocation3 + $0x1], 1 }
  0xeb   :  { %297 = vsyncpa [#allocation4], 1 }
  0xec   :  { %299 = vsyncpa [#allocation4 + $0x1], 1 }

</bundles_post_ra>
